<compile_context>
chip_gen: v7x
topology: tpu7x:2x2x1
jax: 0.10.0
libtpu: 0.0.40
codegen_flags: <defaults>
</compile_context>

<pallas_src>
import functools

import jax
import jax.numpy as jnp
from jax.experimental import pallas as pl
from jax.experimental.pallas import tpu as pltpu


def _round_up(x, m):
    return (x + m - 1) // m * m


def _tpu_vmem_bytes():
    try:
        return int(pltpu.get_tpu_info().vmem_capacity_bytes)
    except Exception:
        return 64 * 1024 * 1024  # conservative (v7x per-TC VMEM)


def _num_tensorcores():
    """Heuristic TensorCores-per-chip (megacore generations have 2)."""
    try:
        kind = jax.devices()[0].device_kind.lower()
    except Exception:
        return 1
    return 2 if any(t in kind for t in ("v4", "v5p", "v7", "7x")) else 1


def _pick_block_batch(N, block_cap_bytes, per_batch_bytes, n_cores):
    """Largest divisor of N whose x-block fits block_cap; on multi-TC chips keep
    >= 2 grid steps per core so megacore sharding stays balanced."""
    max_bn = max(1, block_cap_bytes // max(per_batch_bytes, 1))
    if n_cores > 1 and N >= 2 * n_cores:
        max_bn = min(max_bn, N // (2 * n_cores))
    max_bn = max(1, min(max_bn, N))
    bn = 1
    for d in range(1, max_bn + 1):
        if N % d == 0:
            bn = d
    return bn


def _pick_spatial_tile(C, HW, block_cap_bytes):
    """Lane-aligned spatial tile for the two-pass (large H*W) path."""
    if HW <= 128:
        return HW  # full extent (legal; masked lanes for tiny feature maps)
    max_elems = block_cap_bytes // (C * 4)
    thw = max(128, (max_elems // 128) * 128)
    return min(thw, _round_up(HW, 128))


# --------------- single-pass kernel: pool + SE + scale on one (Bn, C, HW) slab

def _calayer_kernel(x_ref, w1_ref, b1_ref, w2_ref, b2_ref, o_ref):
    # x: (Bn, C, HW)   w1: (C, Crp)  b1: (1, Crp)  w2: (Crp, C)  b2: (1, C)
    x = x_ref[...]
    y = jnp.mean(x, axis=-1)                                     # (Bn, C) lane reduce
    h = jnp.dot(y, w1_ref[...], preferred_element_type=jnp.float32) + b1_ref[...]
    h = jnp.maximum(h, 0.0)                                      # (Bn, Crp)
    s = jnp.dot(h, w2_ref[...], preferred_element_type=jnp.float32) + b2_ref[...]
    s = jax.nn.sigmoid(s)                                        # (Bn, C)
    o_ref[...] = x * s[:, :, None]                               # broadcast over lanes


# --------------- two-pass kernels (large H*W): pooled SE scales, then rescale

def _pool_se_kernel(x_ref, w1_ref, b1_ref, w2_ref, b2_ref, s_ref, acc_ref, *,
                    hw_total):
    hw_i = pl.program_id(1)

    @pl.when(hw_i == 0)
    def _():
        acc_ref[...] = jnp.zeros_like(acc_ref)

    x = x_ref[...]                                               # (Bn, C, Thw)
    # Mask out-of-range lanes of the last (possibly ragged) spatial tile.
    lane = jax.lax.broadcasted_iota(jnp.int32, x.shape, 2) + hw_i * x.shape[-1]
    acc_ref[...] += jnp.sum(jnp.where(lane < hw_total, x, 0.0), axis=-1)

    @pl.when(hw_i == pl.num_programs(1) - 1)
    def _():
        y = acc_ref[...] * (1.0 / hw_total)                      # (Bn, C) mean
        h = jnp.dot(y, w1_ref[...], preferred_element_type=jnp.float32) + b1_ref[...]
        h = jnp.maximum(h, 0.0)
        s = jnp.dot(h, w2_ref[...], preferred_element_type=jnp.float32) + b2_ref[...]
        s_ref[...] = jax.nn.sigmoid(s)[:, :, None]               # (Bn, C, 1)


def _scale_kernel(x_ref, s_ref, o_ref):
    o_ref[...] = x_ref[...] * s_ref[...]                         # broadcast over lanes


# --------------------------------------------------------------------- wrapper

def calayer_forward(x, w1, b1, w2, b2, *, block_batch=None, max_block_bytes=None):
    """x: (N, C, H, W) f32;  w1: (Cr, C);  b1: (Cr,);  w2: (C, Cr);  b2: (C,)."""
    N, C, H, W = x.shape
    HW = H * W
    Cr = w1.shape[0]
    Crp = _round_up(Cr, 8)   # sublane-align only the tiny hidden dim

    # Pre-transpose + zero-pad the tiny SE weights (exact: padded rows/cols = 0).
    w1_t = jnp.pad(jnp.transpose(w1), ((0, 0), (0, Crp - Cr)))   # (C, Crp)
    b1_r = jnp.pad(b1, (0, Crp - Cr)).reshape(1, Crp)
    w2_t = jnp.pad(jnp.transpose(w2), ((0, Crp - Cr), (0, 0)))   # (Crp, C)
    b2_r = b2.reshape(1, C)

    x_flat = x.reshape(N, C, HW)

    vmem_cap = _tpu_vmem_bytes()
    n_cores = _num_tensorcores()
    # Per-block budget: ~4 blocks live (double-buffered input and output),
    # ~40% headroom for weights/scratch/compiler; cap at 8 MiB (HBM roofline
    # is already ~86% at a few MiB per block).
    block_cap = min(int(vmem_cap * 0.6) // 4, 8 * 1024 * 1024)
    if max_block_bytes is not None:
        block_cap = int(max_block_bytes)

    weight_bytes = (C * Crp * 2 + Crp + C) * 4
    per_batch_bytes = C * HW * 4

    if block_batch is None and per_batch_bytes > block_cap:
        # ---- two-pass path: one batch element's slab already exceeds the budget.
        thw = _pick_spatial_tile(C, HW, block_cap)
        n_hw = pl.cdiv(HW, thw)
        block_bytes = C * thw * 4
        vmem_limit = int(min(max(8 * block_bytes + weight_bytes + (4 << 20), 32 << 20),
                             0.9 * vmem_cap))

        scales = pl.pallas_call(
            functools.partial(_pool_se_kernel, hw_total=HW),
            out_shape=jax.ShapeDtypeStruct((N, C, 1), jnp.float32),
            grid=(N, n_hw),
            in_specs=[
                pl.BlockSpec((1, C, thw), lambda n, h: (n, 0, h)),
                pl.BlockSpec((C, Crp), lambda n, h: (0, 0)),
                pl.BlockSpec((1, Crp), lambda n, h: (0, 0)),
                pl.BlockSpec((Crp, C), lambda n, h: (0, 0)),
                pl.BlockSpec((1, C), lambda n, h: (0, 0)),
            ],
            out_specs=pl.BlockSpec((1, C, 1), lambda n, h: (n, 0, 0)),
            scratch_shapes=[pltpu.VMEM((1, C), jnp.float32)],
            compiler_params=pltpu.CompilerParams(
                dimension_semantics=("parallel", "arbitrary"),
                vmem_limit_bytes=vmem_limit),
        )(x_flat, w1_t, b1_r, w2_t, b2_r)

        out_flat = pl.pallas_call(
            _scale_kernel,
            out_shape=jax.ShapeDtypeStruct((N, C, HW), x.dtype),
            grid=(N, n_hw),
            in_specs=[
                pl.BlockSpec((1, C, thw), lambda n, h: (n, 0, h)),
                pl.BlockSpec((1, C, 1), lambda n, h: (n, 0, 0)),
            ],
            out_specs=pl.BlockSpec((1, C, thw), lambda n, h: (n, 0, h)),
            compiler_params=pltpu.CompilerParams(
                dimension_semantics=("parallel", "parallel"),
                vmem_limit_bytes=vmem_limit),
            cost_estimate=pl.CostEstimate(
                flops=N * C * HW, transcendentals=0,
                bytes_accessed=2 * N * C * HW * 4 + N * C * 4),
        )(x_flat, scales)
        return out_flat.reshape(N, C, H, W)

    # ---- single-pass path: whole (Bn, C, HW) slab resident; x read exactly once.
    if block_batch is not None:
        assert N % block_batch == 0, "block_batch must divide N"
        bn = block_batch
    else:
        bn = _pick_block_batch(N, block_cap, per_batch_bytes, n_cores)

    block_bytes = bn * per_batch_bytes
    vmem_limit = int(min(max(4 * block_bytes + weight_bytes + (4 << 20), 32 << 20),
                         0.9 * vmem_cap))

    cost = pl.CostEstimate(
        flops=4 * N * C * Cr + 2 * N * C * HW,
        transcendentals=N * C,
        bytes_accessed=2 * N * C * HW * 4 + weight_bytes,
    )

    out_flat = pl.pallas_call(
        _calayer_kernel,
        out_shape=jax.ShapeDtypeStruct((N, C, HW), x.dtype),
        grid=(N // bn,),
        in_specs=[
            pl.BlockSpec((bn, C, HW), lambda n: (n, 0, 0)),
            pl.BlockSpec((C, Crp), lambda n: (0, 0)),
            pl.BlockSpec((1, Crp), lambda n: (0, 0)),
            pl.BlockSpec((Crp, C), lambda n: (0, 0)),
            pl.BlockSpec((1, C), lambda n: (0, 0)),
        ],
        out_specs=pl.BlockSpec((bn, C, HW), lambda n: (n, 0, 0)),
        compiler_params=pltpu.CompilerParams(
            dimension_semantics=("parallel",),
            vmem_limit_bytes=vmem_limit),
        cost_estimate=cost,
    )(x_flat, w1_t, b1_r, w2_t, b2_r)

    return out_flat.reshape(N, C, H, W)


def calayer_reference(x, w1, b1, w2, b2):
    # pure-JAX reference of the PyTorch forward
    y = jnp.mean(x, axis=(2, 3), keepdims=True)                  # (N, C, 1, 1)
    y = jnp.einsum('rc,ncij->nrij', w1, y) + b1[None, :, None, None]
    y = jnp.maximum(y, 0.0)
    y = jnp.einsum('cr,nrij->ncij', w2, y) + b2[None, :, None, None]
    return x * jax.nn.sigmoid(y)


if __name__ == "__main__":
    # channel must divide by reduction=7 -> channel=14, hidden=2.
    # N=8 exercises batch blocking with the parallel batch grid.
    N, C, H, W = 8, 14, 16, 16
    reduction = 7
    Cr = C // reduction

    key = jax.random.PRNGKey(0)
    kx, k1, k2, k3, k4 = jax.random.split(key, 5)
    x = jax.random.normal(kx, (N, C, H, W), dtype=jnp.float32)
    # shapes match nn.Conv2d(C, Cr, 1) / nn.Conv2d(Cr, C, 1) with 1x1 dims squeezed
    w1 = 0.1 * jax.random.normal(k1, (Cr, C), dtype=jnp.float32)
    b1 = 0.1 * jax.random.normal(k2, (Cr,), dtype=jnp.float32)
    w2 = 0.1 * jax.random.normal(k3, (C, Cr), dtype=jnp.float32)
    b2 = 0.1 * jax.random.normal(k4, (C,), dtype=jnp.float32)

    ref = calayer_reference(x, w1, b1, w2, b2)

    # Main (single-pass, batch-blocked) path.
    out = jax.block_until_ready(calayer_forward(x, w1, b1, w2, b2))
    assert out.shape == (N, C, H, W)
    assert jnp.max(jnp.abs(out - ref)) < 5e-5, "single-pass mismatch vs reference"

    # Force the large-H*W two-pass path with a tiny per-block budget
    # (exercises the spatially tiled pooling + scale kernels).
    out2 = jax.block_until_ready(
        calayer_forward(x, w1, b1, w2, b2, max_block_bytes=8 * 1024))
    assert jnp.max(jnp.abs(out2 - ref)) < 5e-5, "two-pass mismatch vs reference"

    print("KERNEL_OK")
</pallas_src>

<mosaic_0001>
module attributes {stable_mosaic.version = 11 : i64} {
  func.func @_calayer_kernel(%arg0: i32, %arg1: memref<8x14x256xf32, #tpu.memory_space<vmem>>, %arg2: memref<14x8xf32, #tpu.memory_space<vmem>>, %arg3: memref<1x8xf32, #tpu.memory_space<vmem>>, %arg4: memref<8x14xf32, #tpu.memory_space<vmem>>, %arg5: memref<1x14xf32, #tpu.memory_space<vmem>>, %arg6: memref<8x14x256xf32, #tpu.memory_space<vmem>>) attributes {dimension_semantics = [#tpu.dimension_semantics<parallel>], iteration_bounds = array<i64: 1>, scalar_prefetch = 0 : i64, scratch_operands = 0 : i64, tpu.core_type = #tpu.core_type<tc>, window_params = [{transform_indices = @transform_0, window_bounds = array<i64: 8, 14, 256>}, {pipeline_mode = #tpu.pipeline_mode<synchronous>, transform_indices = @transform_1, window_bounds = array<i64: 14, 8>}, {pipeline_mode = #tpu.pipeline_mode<synchronous>, transform_indices = @transform_2, window_bounds = array<i64: 1, 8>}, {pipeline_mode = #tpu.pipeline_mode<synchronous>, transform_indices = @transform_3, window_bounds = array<i64: 8, 14>}, {pipeline_mode = #tpu.pipeline_mode<synchronous>, transform_indices = @transform_4, window_bounds = array<i64: 1, 14>}, {transform_indices = @transform_5, window_bounds = array<i64: 8, 14, 256>}]} {
    %c0 = arith.constant 0 : index
    %c0_0 = arith.constant 0 : index
    %c0_1 = arith.constant 0 : index
    %0 = vector.load %arg1[%c0, %c0_0, %c0_1] : memref<8x14x256xf32, #tpu.memory_space<vmem>>, vector<8x14x256xf32>
    %cst = arith.constant dense<0.000000e+00> : vector<8x14xf32>
    %1 = vector.multi_reduction <add>, %0, %cst [2] : vector<8x14x256xf32> to vector<8x14xf32>
    %cst_2 = arith.constant 2.560000e+02 : f32
    %2 = vector.broadcast %cst_2 : f32 to vector<8x14xf32>
    %3 = arith.divf %1, %2 : vector<8x14xf32>
    %c0_3 = arith.constant 0 : index
    %c0_4 = arith.constant 0 : index
    %4 = vector.load %arg2[%c0_3, %c0_4] : memref<14x8xf32, #tpu.memory_space<vmem>>, vector<14x8xf32>
    %cst_5 = arith.constant dense<0.000000e+00> : vector<8x8xf32>
    %5 = tpu.matmul %3, %4, %cst_5 {dimension_numbers = #tpu.dot_dimension_numbers<[1], [0], [0], [1], [0, 0, 1, 1], [], []>} : vector<8x14xf32>, vector<14x8xf32>, vector<8x8xf32> -> vector<8x8xf32>
    %c0_6 = arith.constant 0 : index
    %c0_7 = arith.constant 0 : index
    %6 = vector.load %arg3[%c0_6, %c0_7] : memref<1x8xf32, #tpu.memory_space<vmem>>, vector<1x8xf32>
    %7 = vector.broadcast %6 : vector<1x8xf32> to vector<8x8xf32>
    %8 = arith.addf %5, %7 : vector<8x8xf32>
    %cst_8 = arith.constant 0.000000e+00 : f32
    %9 = vector.broadcast %cst_8 : f32 to vector<8x8xf32>
    %10 = arith.maximumf %8, %9 : vector<8x8xf32>
    %c0_9 = arith.constant 0 : index
    %c0_10 = arith.constant 0 : index
    %11 = vector.load %arg4[%c0_9, %c0_10] : memref<8x14xf32, #tpu.memory_space<vmem>>, vector<8x14xf32>
    %cst_11 = arith.constant dense<0.000000e+00> : vector<8x14xf32>
    %12 = tpu.matmul %10, %11, %cst_11 {dimension_numbers = #tpu.dot_dimension_numbers<[1], [0], [0], [1], [0, 0, 1, 1], [], []>} : vector<8x8xf32>, vector<8x14xf32>, vector<8x14xf32> -> vector<8x14xf32>
    %c0_12 = arith.constant 0 : index
    %c0_13 = arith.constant 0 : index
    %13 = vector.load %arg5[%c0_12, %c0_13] : memref<1x14xf32, #tpu.memory_space<vmem>>, vector<1x14xf32>
    %14 = vector.broadcast %13 : vector<1x14xf32> to vector<8x14xf32>
    %15 = arith.addf %12, %14 : vector<8x14xf32>
    %16 = arith.negf %15 : vector<8x14xf32>
    %17 = math.exp %16 : vector<8x14xf32>
    %cst_14 = arith.constant 1.000000e+00 : f32
    %18 = vector.broadcast %cst_14 : f32 to vector<8x14xf32>
    %19 = arith.addf %18, %17 : vector<8x14xf32>
    %20 = arith.divf %18, %19 : vector<8x14xf32>
    %21 = vector.shape_cast %20 : vector<8x14xf32> to vector<8x14x1xf32>
    %22 = vector.broadcast %21 : vector<8x14x1xf32> to vector<8x14x256xf32>
    %23 = arith.mulf %0, %22 : vector<8x14x256xf32>
    %c0_15 = arith.constant 0 : index
    %c0_16 = arith.constant 0 : index
    %c0_17 = arith.constant 0 : index
    %24 = vector.load %arg6[%c0_15, %c0_16, %c0_17] : memref<8x14x256xf32, #tpu.memory_space<vmem>>, vector<8x14x256xf32>
    tpu.vector_store %arg6[%c0_15, %c0_16, %c0_17], %23 {strides = array<i32>} : memref<8x14x256xf32, #tpu.memory_space<vmem>>, vector<8x14x256xf32>,
    return
  }
  func.func @transform_0(%arg0: i32) -> (i32, i32, i32) {
    %c0_i32 = arith.constant 0 : i32
    %c0_i32_0 = arith.constant 0 : i32
    %c0_i32_1 = arith.constant 0 : i32
    return %arg0, %c0_i32, %c0_i32_0 : i32, i32, i32
  }
  func.func @transform_1(%arg0: i32) -> (i32, i32) {
    %c0_i32 = arith.constant 0 : i32
    %c0_i32_0 = arith.constant 0 : i32
    %c0_i32_1 = arith.constant 0 : i32
    return %c0_i32, %c0_i32_0 : i32, i32
  }
  func.func @transform_2(%arg0: i32) -> (i32, i32) {
    %c0_i32 = arith.constant 0 : i32
    %c0_i32_0 = arith.constant 0 : i32
    %c0_i32_1 = arith.constant 0 : i32
    return %c0_i32, %c0_i32_0 : i32, i32
  }
  func.func @transform_3(%arg0: i32) -> (i32, i32) {
    %c0_i32 = arith.constant 0 : i32
    %c0_i32_0 = arith.constant 0 : i32
    %c0_i32_1 = arith.constant 0 : i32
    return %c0_i32, %c0_i32_0 : i32, i32
  }
  func.func @transform_4(%arg0: i32) -> (i32, i32) {
    %c0_i32 = arith.constant 0 : i32
    %c0_i32_0 = arith.constant 0 : i32
    %c0_i32_1 = arith.constant 0 : i32
    return %c0_i32, %c0_i32_0 : i32, i32
  }
  func.func @transform_5(%arg0: i32) -> (i32, i32, i32) {
    %c0_i32 = arith.constant 0 : i32
    %c0_i32_0 = arith.constant 0 : i32
    %c0_i32_1 = arith.constant 0 : i32
    return %arg0, %c0_i32, %c0_i32_0 : i32, i32, i32
  }
}

</mosaic_0001>

<bundles_post_ra>
// kernel: tpu_custom_call.1
= control target key start
LH: loop header
LB: loop body
LE: loop exit
PB: predicated region body
PF: predicated region fallthrough
CT: control target
= control target key end

     0   :  { %vm55_vm0 = vcmask 1045504   ;;  %vm606_vm1 = vmmov 1   ;;  %vm607_vm3 = vmmov 0   ;;  %vm170_vm4 = vcmask 130112   ;;  %s1022_s0 = inlined_call_operand.vmem [shape: f32[8,14,256], index: 0, kind: input, shape index: {}]   ;;  %s1023_s1 = inlined_call_operand.vmem [shape: f32[14,8], index: 1, kind: input, shape index: {}]   ;;  %s1024_s3 = inlined_call_operand.vmem [shape: f32[8,14], index: 3, kind: input, shape index: {}]   ;;  %s1025_s2 = inlined_call_operand.vmem [shape: f32[1,8], index: 2, kind: input, shape index: {}]   ;;  %s1026_s4 = inlined_call_operand.vmem [shape: f32[1,14], index: 4, kind: input, shape index: {}]   ;;  %s1027_s5 = inlined_call_operand.vmem [shape: f32[8,14,256], index: 5, kind: output, shape index: {}]  }
   0x1   :  { %v642_v0 = vld [vmem:[%s1022_s0 + $0x20] sm:$0xff]  ;;  %v647_v1 = vld [vmem:[%s1022_s0 + $0x28] sm:$0xff]  ;;  %v664_v5 = vld [vmem:[%s1022_s0 + $0x30] sm:$0x3f]  ;;  %vm235_vm5 = vcmask 1041409   ;;  %vm237_vm6 = vcmask 1042434  }
   0x2   :  { %v652_v2 = vld [vmem:[%s1022_s0] sm:$0xff]  ;;  %v61_v3 = vadd.f32 %v647_v1, %v642_v0  ;;  %v659_v4 = vld [vmem:[%s1022_s0 + $0x8] sm:$0xff]  ;;  %v669_v6 = vld [vmem:[%s1022_s0 + $0x38] sm:$0x3f]  ;;  %v64_v8 = vsel %vm55_vm0, %v664_v5, 0.0  ;;  %vm239_vm7 = vcmask 1043459  }
   0x3   :  { %v52_v7 = vadd.f32 %v659_v4, %v652_v2  ;;  %v65_v9 = vsel %vm55_vm0, %v669_v6, 0.0  ;;  %v680_v10 = vld [vmem:[%s1022_s0 + $0x10] sm:$0x3f]  ;;  %v685_v11 = vld [vmem:[%s1022_s0 + $0x18] sm:$0x3f]  ;;  %v708_v20 = vld [vmem:[%s1022_s0 + $0x40] sm:$0xff] }
   0x4   :  { %62 = vadd.xlane.f32.xlu1 %v61_v3  ;;  %v66_v12 = vadd.f32 %v65_v9, %v64_v8  ;;  %v56_v13 = vsel %vm55_vm0, %v680_v10, 0.0  ;;  %v57_v14 = vsel %vm55_vm0, %v685_v11, 0.0  ;;  %v694_v15 = vld [vmem:[%s1022_s0 + $0x50] sm:$0x3f]  ;;  %v699_v16 = vld [vmem:[%s1022_s0 + $0x58] sm:$0x3f]  ;;  %vm595_vm2 = vmpackc.low %vm55_vm0, %vm606_vm1 }
   0x5   :  { %53 = vadd.xlane.f32.xlu0 %v52_v7  ;;  %v58_v17 = vadd.f32 %v57_v14, %v56_v13  ;;  %v72_v18 = vsel %vm55_vm0, %v694_v15, 0.0  ;;  %v73_v19 = vsel %vm55_vm0, %v699_v16, 0.0  ;;  %v713_v21 = vld [vmem:[%s1022_s0 + $0x48] sm:$0xff]  ;;  %v718_v22 = vld [vmem:[%s1022_s0 + $0x70] sm:$0x3f]  ;;  %v734_v28 = vld [vmem:[%s1022_s0 + $0x60] sm:$0xff] }
   0x6   :  { %v723_v23 = vld [vmem:[%s1022_s0 + $0x78] sm:$0x3f]  ;;  %v74_v24 = vadd.f32 %v73_v19, %v72_v18  ;;  %v69_v25 = vadd.f32 %v713_v21, %v708_v20  ;;  %v80_v26 = vsel %vm55_vm0, %v718_v22, 0.0  ;;  %v739_v29 = vld [vmem:[%s1022_s0 + $0x68] sm:$0xff]  ;;  %v744_v30 = vld [vmem:[%s1022_s0 + $0x90] sm:$0x3f]  ;;  %v159_v19 = vlaneseq }
   0x7   :  { %v81_v27 = vsel %vm55_vm0, %v723_v23, 0.0  ;;  %v749_v31 = vld [vmem:[%s1022_s0 + $0x98] sm:$0x3f]  ;;  %v77_v33 = vadd.f32 %v739_v29, %v734_v28  ;;  %v88_v34 = vsel %vm55_vm0, %v744_v30, 0.0  ;;  %v760_v36 = vld [vmem:[%s1022_s0 + $0x80] sm:$0xff]  ;;  %v765_v37 = vld [vmem:[%s1022_s0 + $0x88] sm:$0xff] }
   0x8   :  { %67 = vadd.xlane.f32.xlu1 %v66_v12  ;;  %v82_v32 = vadd.f32 %v81_v27, %v80_v26  ;;  %v89_v35 = vsel %vm55_vm0, %v749_v31, 0.0  ;;  %v770_v38 = vld [vmem:[%s1022_s0 + $0xb0] sm:$0x3f]  ;;  %v775_v39 = vld [vmem:[%s1022_s0 + $0xb8] sm:$0x3f]  ;;  %v85_v41 = vadd.f32 %v765_v37, %v760_v36  ;;  %v786_v44 = vld [vmem:[%s1022_s0 + $0xa0] sm:$0xff] }
   0x9   :  { %59 = vadd.xlane.f32.xlu0 %v58_v17  ;;  %v90_v40 = vadd.f32 %v89_v35, %v88_v34  ;;  %v96_v42 = vsel %vm55_vm0, %v770_v38, 0.0  ;;  %v97_v43 = vsel %vm55_vm0, %v775_v39, 0.0  ;;  %v791_v45 = vld [vmem:[%s1022_s0 + $0xa8] sm:$0xff]  ;;  %v796_v46 = vld [vmem:[%s1022_s0 + $0xd0] sm:$0x3f]  ;;  %v812_v52 = vld [vmem:[%s1022_s0 + $0xc0] sm:$0xff] }
   0xa   :  { %v801_v47 = vld [vmem:[%s1022_s0 + $0xd8] sm:$0x3f]  ;;  %v98_v48 = vadd.f32 %v97_v43, %v96_v42  ;;  %v93_v49 = vadd.f32 %v791_v45, %v786_v44  ;;  %v104_v50 = vsel %vm55_vm0, %v796_v46, 0.0  ;;  %v817_v53 = vld [vmem:[%s1022_s0 + $0xc8] sm:$0xff]  ;;  %v822_v54 = vld [vmem:[%s1022_s0 + $0xf0] sm:$0x3f] }
   0xb   :  { %v105_v51 = vsel %vm55_vm0, %v801_v47, 0.0  ;;  %v827_v55 = vld [vmem:[%s1022_s0 + $0xf8] sm:$0x3f]  ;;  %v101_v57 = vadd.f32 %v817_v53, %v812_v52  ;;  %v112_v58 = vsel %vm55_vm0, %v822_v54, 0.0  ;;  %v838_v60 = vld [vmem:[%s1022_s0 + $0xe0] sm:$0xff]  ;;  %v843_v61 = vld [vmem:[%s1022_s0 + $0xe8] sm:$0xff] }
   0xc   :  { %75 = vadd.xlane.f32.xlu1 %v74_v24  ;;  %v106_v56 = vadd.f32 %v105_v51, %v104_v50  ;;  %v113_v59 = vsel %vm55_vm0, %v827_v55, 0.0  ;;  %v109_v63 = vadd.f32 %v843_v61, %v838_v60  ;;  %v134_v3 = vld [vmem:[%s1023_s1] sm:$0xff]  ;;  %v135_v7 = vld [vmem:[%s1023_s1 + $0x8] sm:$0x3f]  ;;  %v605_v9 = vmov 0.0|0.0  }
   0xd   :  { %70 = vadd.xlane.f32.xlu0 %v69_v25  ;;  %v114_v62 = vadd.f32 %v113_v59, %v112_v58  ;;  %v594_v8 = vpack.c.bf16 %v135_v7, %v134_v3  ;;  %593 = vmatprep.subr.bf16.mxu0 %v605_v9  ;;  %v608_v12 = vmov 0.0   ;;  %v160_v26 = vand.u32 127, %v159_v19 }
   0xe   :  { %585 = vmatprep.mubr.msk.f32.mxu0 %vm607_vm3, %v608_v12  ;;  %588 = vmatprep.subr.mxu1 %v608_v12  ;;  %v854_v34 = vshrl.u32 %v159_v19, 7  ;;  %vm241_vm8 = vcmask 1044484   ;;  %vm243_vm9 = vcmask 1045509   ;;  %vm245_vm10 = vcmask 1046534  }
   0xf   :  { %596 = vmatpush3.bf16.msk.msra.mxu0 %vm595_vm2, %v594_v8  ;;  %590 = vmatprep.mubr.msk.f32.mxu1 %vm607_vm3, %v608_v12  ;;  %vm247_vm11 = vcmask 1047559   ;;  %vm249_vm12 = vcmask 113664   ;;  %vm334_vm13 = vcmask 64512  }
  0x10   :  { %83 = vadd.xlane.f32.xlu1 %v82_v32  ;;  %v165_v32 = vadd.s32 4294967288, %v160_v26 }
  0x11   :  { %78 = vadd.xlane.f32.xlu0 %v77_v33 }
  0x14   :  { %91 = vadd.xlane.f32.xlu1 %v90_v40  ;;  %v857_v40 = vsub.s32 %v165_v32, %v854_v34 }
  0x15   :  { %86 = vadd.xlane.f32.xlu0 %v85_v41 }
  0x18   :  { %99 = vadd.xlane.f32.xlu1 %v98_v48  ;;  %v163_v48 = vsub.s32 %v160_v26, %v854_v34 }
  0x19   :  { %94 = vadd.xlane.f32.xlu0 %v93_v49 }
  0x1c   :  { %107 = vadd.xlane.f32.xlu1 %v106_v56 }
  0x1d   :  { %102 = vadd.xlane.f32.xlu0 %v101_v57 }
  0x20   :  { %115 = vadd.xlane.f32.xlu1 %v114_v62 }
  0x21   :  { %110 = vadd.xlane.f32.xlu0 %v109_v63 }
  0x91   :  { %v63_v13 = vpop.xlane.xlu1 %62 }
  0x92   :  { %v54_v14 = vpop.xlane.xlu0 %53  ;;  %v120_v49 = vmul.f32 0.00390625, %v63_v13 }
  0x93   :  { %v118_v56 = vmul.f32 0.00390625, %v54_v14 }
  0x95   :  { %v68_v17 = vpop.xlane.xlu1 %67  ;;  %v164_v19 = vrot.slane %v118_v56, %v163_v48 }
  0x96   :  { %v60_v18 = vpop.xlane.xlu0 %59  ;;  %v121_v41 = vmul.f32 0.00390625, %v68_v17  ;;  %v175_v17 = vrot.slane %v120_v49, %v163_v48 }
  0x97   :  { %v119_v43 = vmul.f32 0.00390625, %v60_v18 }
  0x98   :  { %v179_v62 = vrot.slane %v121_v41, %v857_v40 }
  0x99   :  { %v76_v24 = vpop.xlane.xlu1 %75  ;;  %v169_v8 = vrot.slane %v119_v43, %v857_v40 }
  0x9a   :  { %v71_v25 = vpop.xlane.xlu0 %70  ;;  %v123_v50 = vmul.f32 0.00390625, %v76_v24  ;;  %v180_v26 = vsel %vm170_vm4, %v179_v62, %v175_v17 }
  0x9b   :  { %v122_v51 = vmul.f32 0.00390625, %v71_v25  ;;  %v171_v41 = vsel %vm170_vm4, %v169_v8, %v164_v19 }
  0x9c   :  { %v188_v18 = vrot.slane %v123_v50, %v857_v40 }
  0x9d   :  { %v84_v27 = vpop.xlane.xlu1 %83  ;;  %v184_v13 = vrot.slane %v122_v51, %v163_v48 }
  0x9e   :  { %v79_v33 = vpop.xlane.xlu0 %78  ;;  %v125_v57 = vmul.f32 0.00390625, %v84_v27 }
  0x9f   :  { %v124_v58 = vmul.f32 0.00390625, %v79_v33  ;;  %v189_v50 = vsel %vm170_vm4, %v188_v18, %v184_v13 }
  0xa0   :  { %v197_v14 = vrot.slane %v125_v57, %v857_v40 }
  0xa1   :  { %v92_v35 = vpop.xlane.xlu1 %91  ;;  %v193_v24 = vrot.slane %v124_v58, %v163_v48 }
  0xa2   :  { %v87_v42 = vpop.xlane.xlu0 %86  ;;  %v127_v63 = vmul.f32 0.00390625, %v92_v35 }
  0xa3   :  { %v126_v3 = vmul.f32 0.00390625, %v87_v42  ;;  %v198_v56 = vsel %vm170_vm4, %v197_v14, %v193_v24 }
  0xa4   :  { %v206_v27 = vrot.slane %v127_v63, %v857_v40 }
  0xa5   :  { %v100_v59 = vpop.xlane.xlu1 %99  ;;  %v202_v32 = vrot.slane %v126_v3, %v163_v48 }
  0xa6   :  { %v95_v7 = vpop.xlane.xlu0 %94  ;;  %v129_v9 = vmul.f32 0.00390625, %v100_v59  ;;  %v236_v59 = vsel %vm235_vm5, %v180_v26, %v171_v41  ;;  %v573_v41 = vld [vmem:[%s1026_s4] ss:$0 sm:$0xff] }
  0xa7   :  { %v128_v12 = vmul.f32 0.00390625, %v95_v7  ;;  %v207_v62 = vsel %vm170_vm4, %v206_v27, %v202_v32  ;;  %v238_v7 = vsel %vm237_vm6, %v189_v50, %v236_v59  ;;  %v326_v27 = vld [vmem:[%s1024_s3] sm:$0xff] }
  0xa8   :  { %v215_v42 = vrot.slane %v129_v9, %v857_v40  ;;  %589 = vmatpush3.msra.mxu1 %v326_v27 }
  0xa9   :  { %v108_v25 = vpop.xlane.xlu1 %107  ;;  %v211_v43 = vrot.slane %v128_v12, %v163_v48  ;;  %v240_v12 = vsel %vm239_vm7, %v198_v56, %v238_v7 }
  0xaa   :  { %v131_v33 = vmul.f32 0.00390625, %v108_v25  ;;  %v103_v35 = vpop.xlane.xlu0 %102  ;;  %v242_v13 = vsel %vm241_vm8, %v207_v62, %v240_v12  ;;  %v427_v62 = vsub.s32 1, %v854_v34  ;;  %v460_v12 = vsub.s32 4, %v854_v34 }
  0xab   :  { %v130_v49 = vmul.f32 0.00390625, %v103_v35  ;;  %v216_v8 = vsel %vm170_vm4, %v215_v42, %v211_v43 }
  0xac   :  { %v224_v51 = vrot.slane %v131_v33, %v857_v40  ;;  %v244_v14 = vsel %vm243_vm9, %v216_v8, %v242_v13  ;;  %v449_v8 = vsub.s32 3, %v854_v34 }
  0xad   :  { %v220_v57 = vrot.slane %v130_v49, %v163_v48  ;;  %v116_v58 = vpop.xlane.xlu1 %115 }
  0xae   :  { %v133_v63 = vmul.f32 0.00390625, %v116_v58  ;;  %v111_v3 = vpop.xlane.xlu0 %110 }
  0xaf   :  { %v132_v9 = vmul.f32 0.00390625, %v111_v3  ;;  %v225_v17 = vsel %vm170_vm4, %v224_v51, %v220_v57  ;;  %v416_v57 = vsub.s32 0, %v854_v34 }
  0xb0   :  { %v233_v18 = vrot.slane %v133_v63, %v857_v40  ;;  %v246_v25 = vsel %vm245_vm10, %v225_v17, %v244_v14  ;;  %v570_v40 = vld [vmem:[%s1025_s2] ss:$0 sm:$0xff]  ;;  %v438_v63 = vsub.s32 2, %v854_v34 }
  0xb1   :  { %v229_v19 = vrot.slane %v132_v9, %v163_v48 }
  0xb3   :  { %v234_v24 = vsel %vm170_vm4, %v233_v18, %v229_v19  ;;  %v471_v18 = vsub.s32 5, %v854_v34  ;;  %v482_v19 = vsub.s32 6, %v854_v34 }
  0xb4   :  { %v248_v26 = vsel %vm247_vm11, %v234_v24, %v246_v25  ;;  %v493_v24 = vsub.s32 7, %v854_v34 }
  0xb5   :  { %586 = vmatmul.mubr.msk.f32.vlgmr.msra.gmra.mrb[0].mxu0 %vm249_vm12, %v248_v26 }
 0x188   :  { %v321_v32 = vpop.f32.mrb[0].mxu0 }
 0x189   :  { %v322_v33 = vadd.f32 %v570_v40, %v321_v32  ;;  %v587_v48 = vpop.f32.mrb[1].mxu0 }
 0x18b   :  { %v325_v35 = vmax.f32 %v322_v33, 0.0 }
 0x18d   :  { %591 = vmatmul.mubr.msk.f32.vlgmr.msra.gmra.mrb[0].mxu1 %vm334_vm13, %v325_v35 }
 0x260   :  { %v404_v42 = vpop.f32.mrb[0].mxu1 }
 0x261   :  { %v405_v43 = vadd.f32 %v573_v41, %v404_v42  ;;  %v592_v49 = vpop.f32.mrb[1].mxu1 }
 0x263   :  { %v575_v50 = vmul.f32 -1.442695, %v405_v43 }
 0x265   :  { %601 = vpow2.f32 %v575_v50 }
 0x26f   :  { %v602_v51 = vpop.eup %601 }
 0x270   :  { %v411_v56 = vadd.f32 1.0, %v602_v51 }
 0x272   :  { %603 = vrcp.f32 %v411_v56 }
 0x27c   :  { %v604_v58 = vpop.eup %603 }
 0x27d   :  { %v417_v59 = vrot.slane %v604_v58, %v416_v57  ;;  %v428_v3 = vrot.slane %v604_v58, %v427_v62  ;;  %v439_v7 = vrot.slane %v604_v58, %v438_v63  ;;  %v450_v9 = vrot.slane %v604_v58, %v449_v8 }
 0x27e   :  { %v461_v17 = vrot.slane %v604_v58, %v460_v12  ;;  %v472_v13 = vrot.slane %v604_v58, %v471_v18  ;;  %v483_v14 = vrot.slane %v604_v58, %v482_v19  ;;  %v494_v25 = vrot.slane %v604_v58, %v493_v24 }
 0x27f   :  { %423 = vbcast.lane.b32.xlu1 %v417_v59, 264  ;;  %419 = vbcast.lane.b32.xlu0 %v417_v59, 256 }
 0x283   :  { %430 = vbcast.lane.b32.xlu1 %v428_v3, 256  ;;  %441 = vbcast.lane.b32.xlu0 %v439_v7, 256 }
 0x287   :  { %434 = vbcast.lane.b32.xlu1 %v428_v3, 264  ;;  %452 = vbcast.lane.b32.xlu0 %v450_v9, 256 }
 0x28b   :  { %445 = vbcast.lane.b32.xlu1 %v439_v7, 264  ;;  %463 = vbcast.lane.b32.xlu0 %v461_v17, 256 }
 0x28f   :  { %456 = vbcast.lane.b32.xlu1 %v450_v9, 264  ;;  %474 = vbcast.lane.b32.xlu0 %v472_v13, 256 }
 0x293   :  { %467 = vbcast.lane.b32.xlu1 %v461_v17, 264  ;;  %485 = vbcast.lane.b32.xlu0 %v483_v14, 256 }
 0x297   :  { %478 = vbcast.lane.b32.xlu1 %v472_v13, 264  ;;  %496 = vbcast.lane.b32.xlu0 %v494_v25, 256 }
 0x29b   :  { %489 = vbcast.lane.b32.xlu1 %v483_v14, 264 }
 0x29f   :  { %500 = vbcast.lane.b32.xlu1 %v494_v25, 264 }
 0x2f1   :  { %v424_v26 = vpop.permute.xlu1 %423  ;;  %v420_v27 = vpop.permute.xlu0 %419 }
 0x2f2   :  { %v504_v40 = vmul.f32 %v424_v26, %v680_v10  ;;  %v505_v32 = vmul.f32 %v424_v26, %v685_v11  ;;  %v502_v33 = vmul.f32 %v420_v27, %v652_v2  ;;  %v503_v48 = vmul.f32 %v420_v27, %v659_v4 }
 0x2f4   :  { %536 = vst [vmem:[%s1027_s5 + $0x10] sm:$0x3f] %v504_v40  ;;  %537 = vst [vmem:[%s1027_s5 + $0x18] sm:$0x3f] %v505_v32 }
 0x2f5   :  { %534 = vst [vmem:[%s1027_s5] sm:$0xff] %v502_v33  ;;  %535 = vst [vmem:[%s1027_s5 + $0x8] sm:$0xff] %v503_v48  ;;  %v431_v10 = vpop.permute.xlu1 %430  ;;  %v442_v2 = vpop.permute.xlu0 %441 }
 0x2f6   :  { %v506_v4 = vmul.f32 %v431_v10, %v642_v0  ;;  %v507_v11 = vmul.f32 %v431_v10, %v647_v1  ;;  %v510_v34 = vmul.f32 %v442_v2, %v708_v20  ;;  %v511_v35 = vmul.f32 %v442_v2, %v713_v21 }
 0x2f8   :  { %538 = vst [vmem:[%s1027_s5 + $0x20] sm:$0xff] %v506_v4  ;;  %539 = vst [vmem:[%s1027_s5 + $0x28] sm:$0xff] %v507_v11 }
 0x2f9   :  { %542 = vst [vmem:[%s1027_s5 + $0x40] sm:$0xff] %v510_v34  ;;  %543 = vst [vmem:[%s1027_s5 + $0x48] sm:$0xff] %v511_v35  ;;  %v435_v0 = vpop.permute.xlu1 %434  ;;  %v453_v1 = vpop.permute.xlu0 %452 }
 0x2fa   :  { %v508_v20 = vmul.f32 %v435_v0, %v664_v5  ;;  %v509_v21 = vmul.f32 %v435_v0, %v669_v6  ;;  %v514_v41 = vmul.f32 %v453_v1, %v734_v28  ;;  %v515_v42 = vmul.f32 %v453_v1, %v739_v29 }
 0x2fc   :  { %540 = vst [vmem:[%s1027_s5 + $0x30] sm:$0x3f] %v508_v20  ;;  %541 = vst [vmem:[%s1027_s5 + $0x38] sm:$0x3f] %v509_v21 }
 0x2fd   :  { %546 = vst [vmem:[%s1027_s5 + $0x60] sm:$0xff] %v514_v41  ;;  %547 = vst [vmem:[%s1027_s5 + $0x68] sm:$0xff] %v515_v42  ;;  %v446_v5 = vpop.permute.xlu1 %445  ;;  %v464_v6 = vpop.permute.xlu0 %463 }
 0x2fe   :  { %v512_v28 = vmul.f32 %v446_v5, %v694_v15  ;;  %v513_v29 = vmul.f32 %v446_v5, %v699_v16  ;;  %v518_v43 = vmul.f32 %v464_v6, %v760_v36  ;;  %v519_v49 = vmul.f32 %v464_v6, %v765_v37 }
 0x300   :  { %544 = vst [vmem:[%s1027_s5 + $0x50] sm:$0x3f] %v512_v28  ;;  %545 = vst [vmem:[%s1027_s5 + $0x58] sm:$0x3f] %v513_v29 }
 0x301   :  { %550 = vst [vmem:[%s1027_s5 + $0x80] sm:$0xff] %v518_v43  ;;  %551 = vst [vmem:[%s1027_s5 + $0x88] sm:$0xff] %v519_v49  ;;  %v457_v15 = vpop.permute.xlu1 %456  ;;  %v475_v16 = vpop.permute.xlu0 %474 }
 0x302   :  { %v516_v36 = vmul.f32 %v457_v15, %v718_v22  ;;  %v517_v37 = vmul.f32 %v457_v15, %v723_v23  ;;  %v522_v50 = vmul.f32 %v475_v16, %v786_v44  ;;  %v523_v51 = vmul.f32 %v475_v16, %v791_v45 }
 0x304   :  { %548 = vst [vmem:[%s1027_s5 + $0x70] sm:$0x3f] %v516_v36  ;;  %549 = vst [vmem:[%s1027_s5 + $0x78] sm:$0x3f] %v517_v37 }
 0x305   :  { %554 = vst [vmem:[%s1027_s5 + $0xa0] sm:$0xff] %v522_v50  ;;  %555 = vst [vmem:[%s1027_s5 + $0xa8] sm:$0xff] %v523_v51  ;;  %v468_v22 = vpop.permute.xlu1 %467  ;;  %v486_v23 = vpop.permute.xlu0 %485 }
 0x306   :  { %v520_v44 = vmul.f32 %v468_v22, %v744_v30  ;;  %v521_v45 = vmul.f32 %v468_v22, %v749_v31  ;;  %v526_v56 = vmul.f32 %v486_v23, %v812_v52  ;;  %v527_v57 = vmul.f32 %v486_v23, %v817_v53 }
 0x308   :  { %552 = vst [vmem:[%s1027_s5 + $0x90] sm:$0x3f] %v520_v44  ;;  %553 = vst [vmem:[%s1027_s5 + $0x98] sm:$0x3f] %v521_v45 }
 0x309   :  { %558 = vst [vmem:[%s1027_s5 + $0xc0] sm:$0xff] %v526_v56  ;;  %559 = vst [vmem:[%s1027_s5 + $0xc8] sm:$0xff] %v527_v57  ;;  %v479_v30 = vpop.permute.xlu1 %478  ;;  %v497_v31 = vpop.permute.xlu0 %496 }
 0x30a   :  { %v524_v52 = vmul.f32 %v479_v30, %v770_v38  ;;  %v525_v53 = vmul.f32 %v479_v30, %v775_v39  ;;  %v530_v58 = vmul.f32 %v497_v31, %v838_v60  ;;  %v531_v59 = vmul.f32 %v497_v31, %v843_v61 }
 0x30c   :  { %556 = vst [vmem:[%s1027_s5 + $0xb0] sm:$0x3f] %v524_v52  ;;  %557 = vst [vmem:[%s1027_s5 + $0xb8] sm:$0x3f] %v525_v53 }
 0x30d   :  { %562 = vst [vmem:[%s1027_s5 + $0xe0] sm:$0xff] %v530_v58  ;;  %563 = vst [vmem:[%s1027_s5 + $0xe8] sm:$0xff] %v531_v59  ;;  %v490_v38 = vpop.permute.xlu1 %489 }
 0x30e   :  { %v528_v39 = vmul.f32 %v490_v38, %v796_v46  ;;  %v529_v60 = vmul.f32 %v490_v38, %v801_v47 }
 0x310   :  { %560 = vst [vmem:[%s1027_s5 + $0xd0] sm:$0x3f] %v528_v39  ;;  %561 = vst [vmem:[%s1027_s5 + $0xd8] sm:$0x3f] %v529_v60 }
 0x311   :  { %v501_v61 = vpop.permute.xlu1 %500 }
 0x312   :  { %v532_v62 = vmul.f32 %v501_v61, %v822_v54  ;;  %v533_v63 = vmul.f32 %v501_v61, %v827_v55 }
 0x314   :  { %564 = vst [vmem:[%s1027_s5 + $0xf0] sm:$0x3f] %v532_v62  ;;  %565 = vst [vmem:[%s1027_s5 + $0xf8] sm:$0x3f] %v533_v63 }

</bundles_post_ra>
